<compile_context>
chip_gen: v7x
topology: tpu7x:2x2x1
jax: 0.10.0
libtpu: 0.0.40
codegen_flags: <defaults>
</compile_context>

<pallas_src>
import functools
import math

import jax
import jax.numpy as jnp
from jax.experimental import pallas as pl
from jax.experimental.pallas import tpu as pltpu

N_TAYLOR = 2  # must be even, matches module default


def taylor_softmax_kernel(x_ref, o_ref, *, n, valid_cols):
    x = x_ref[...].astype(jnp.float32)

    # Horner evaluation of fn = sum_{i=0..n} x^i / i!   (n even => fn > 0)
    coeffs = [1.0 / math.factorial(i) for i in range(n + 1)]
    fn = jnp.full_like(x, coeffs[n])
    for i in range(n - 1, -1, -1):
        fn = fn * x + coeffs[i]

    # Mask padded / out-of-bounds lanes out of the row sum.  fn(garbage) != 0,
    # so this select is required whenever the block lane width exceeds C.
    # Using a (1, C_pad) iota row keeps the mask cheap and low-pressure.
    if valid_cols != x.shape[-1]:
        col = jax.lax.broadcasted_iota(jnp.int32, (1, x.shape[-1]), 1)
        fn = jnp.where(col < valid_cols, fn, 0.0)

    denom = jnp.sum(fn, axis=-1, keepdims=True)
    # EUP approx reciprocal + one Newton-Raphson step: keeps the divide off the
    # VALU path while retaining ~f32 accuracy.
    inv = pl.reciprocal(denom, approx=True)
    inv = inv * (2.0 - denom * inv)
    o_ref[...] = (fn * inv).astype(o_ref.dtype)


def _round_up(v, m):
    return -(-v // m) * m


def _sublane_multiple(dtype):
    # f32 -> 8, bf16 -> 16, int8/fp8 -> 32 (native (sublane,128) tiling).
    itemsize = jnp.dtype(dtype).itemsize
    return max(8, 32 // itemsize)


def _vmem_budget():
    """(scoped vmem_limit_bytes, live-bytes budget for one pipeline step)."""
    limit = 32 * 1024 * 1024   # safe on v7x's 64 MiB physical VMEM
    live = 24 * 1024 * 1024
    try:
        cap = getattr(pltpu.get_tpu_info(), "vmem_capacity_bytes", 0) or 0
        if cap >= 100 * 1024 * 1024:   # v5e / v6e: 128 MiB physical VMEM
            limit = 64 * 1024 * 1024
            live = 48 * 1024 * 1024
    except Exception:
        pass
    return limit, live


def _choose_tile_rows(b_rows, c_pad, itemsize, sublane, live_budget):
    # Live VMEM per pipeline step:
    #   2 x input block  (double-buffered, input dtype)
    #   2 x output block (double-buffered, input dtype)
    #   ~2 x block of f32 temporaries (x.astype(f32), fn)
    per_row_bytes = c_pad * (4 * itemsize + 2 * 4)
    rows = live_budget // per_row_bytes
    rows = (rows // sublane) * sublane
    rows = max(sublane, min(rows, 8192))
    # Keep >= 2 grid steps so v7x can shard the parallel axis over its 2 TCs.
    two_step_cap = max(sublane, _round_up(pl.cdiv(b_rows, 2), sublane))
    rows = min(rows, two_step_cap)
    return rows


def taylor_softmax(x, *, n=N_TAYLOR):
    """x: (B, C) float array; Taylor-softmax along axis=-1 (PyTorch dim=1)."""
    assert n % 2 == 0
    assert x.ndim == 2, "wrapper handles the (batch, classes) case, dim=1"
    B, C = x.shape

    # Lane-dense block width (multiple of 128); the array itself is NOT padded.
    C_pad = _round_up(max(C, 1), 128)
    itemsize = jnp.dtype(x.dtype).itemsize
    sublane = _sublane_multiple(x.dtype)
    vmem_limit, live_budget = _vmem_budget()
    tile_rows = _choose_tile_rows(B, C_pad, itemsize, sublane, live_budget)
    grid = (pl.cdiv(B, tile_rows),)

    kernel = functools.partial(taylor_softmax_kernel, n=n, valid_cols=C)

    out = pl.pallas_call(
        kernel,
        out_shape=jax.ShapeDtypeStruct((B, C), x.dtype),
        grid_spec=pl.GridSpec(
            grid=grid,
            in_specs=[pl.BlockSpec((tile_rows, C_pad), lambda i: (i, 0))],
            out_specs=pl.BlockSpec((tile_rows, C_pad), lambda i: (i, 0)),
        ),
        compiler_params=pltpu.CompilerParams(
            dimension_semantics=("parallel",),
            vmem_limit_bytes=vmem_limit,
        ),
    )(x)
    return out


def taylor_softmax_ref(x, n=N_TAYLOR, dim=1):
    x = x.astype(jnp.float32)
    fn = jnp.ones_like(x)
    denor = 1.0
    for i in range(1, n + 1):
        denor *= i
        fn = fn + jnp.power(x, i) / denor
    return fn / jnp.sum(fn, axis=dim, keepdims=True)


if __name__ == "__main__":
    key = jax.random.PRNGKey(0)

    # Main small test (batch, num_classes); reduction along dim=1.
    B, C = 16, 32
    x = jax.random.normal(key, (B, C), dtype=jnp.float32)
    out = jax.block_until_ready(taylor_softmax(x))
    ref = taylor_softmax_ref(x)
    assert out.shape == (B, C)
    assert jnp.allclose(out, ref, atol=1e-5, rtol=1e-5), "mismatch vs reference"

    # Ragged shape: exercises the OOB edge block (rows) and lane masking.
    x2 = jax.random.normal(jax.random.PRNGKey(1), (10, 200), dtype=jnp.float32)
    out2 = jax.block_until_ready(taylor_softmax(x2))
    ref2 = taylor_softmax_ref(x2)
    assert out2.shape == (10, 200)
    assert jnp.allclose(out2, ref2, atol=1e-5, rtol=1e-5), "mismatch (ragged)"

    # bf16 input: exercises the dtype-dependent (16, 128) tiling path.
    x3 = jax.random.normal(jax.random.PRNGKey(2), (24, 50), dtype=jnp.bfloat16)
    out3 = jax.block_until_ready(taylor_softmax(x3))
    ref3 = taylor_softmax_ref(x3)
    assert out3.shape == (24, 50)
    assert jnp.allclose(out3.astype(jnp.float32), ref3, atol=2e-2), "mismatch (bf16)"

    print("KERNEL_OK")
</pallas_src>

<mosaic_0001>
module attributes {stable_mosaic.version = 11 : i64} {
  func.func @taylor_softmax_kernel(%arg0: i32, %arg1: memref<8x128xf32, #tpu.memory_space<vmem>>, %arg2: memref<8x128xf32, #tpu.memory_space<vmem>>) attributes {dimension_semantics = [#tpu.dimension_semantics<parallel>], iteration_bounds = array<i64: 2>, scalar_prefetch = 0 : i64, scratch_operands = 0 : i64, tpu.core_type = #tpu.core_type<tc>, window_params = [{transform_indices = @transform_0, window_bounds = array<i64: 8, 128>}, {transform_indices = @transform_1, window_bounds = array<i64: 8, 128>}]} {
    %c0 = arith.constant 0 : index
    %c0_0 = arith.constant 0 : index
    %0 = vector.load %arg1[%c0, %c0_0] : memref<8x128xf32, #tpu.memory_space<vmem>>, vector<8x128xf32>
    %cst = arith.constant 5.000000e-01 : f32
    %1 = vector.broadcast %cst : f32 to vector<8x128xf32>
    %2 = arith.mulf %1, %0 : vector<8x128xf32>
    %cst_1 = arith.constant 1.000000e+00 : f32
    %3 = vector.broadcast %cst_1 : f32 to vector<8x128xf32>
    %4 = arith.addf %2, %3 : vector<8x128xf32>
    %5 = arith.mulf %4, %0 : vector<8x128xf32>
    %cst_2 = arith.constant 1.000000e+00 : f32
    %6 = vector.broadcast %cst_2 : f32 to vector<8x128xf32>
    %7 = arith.addf %5, %6 : vector<8x128xf32>
    %8 = tpu.iota {dimensions = array<i32: 1>} : vector<1x128xi32>
    %c32_i32 = arith.constant 32 : i32
    %9 = vector.broadcast %c32_i32 : i32 to vector<1x128xi32>
    %10 = arith.cmpi slt, %8, %9 : vector<1x128xi32>
    %cst_3 = arith.constant 0.000000e+00 : f32
    %11 = vector.shape_cast %10 : vector<1x128xi1> to vector<1x128xi1>
    %12 = vector.broadcast %11 : vector<1x128xi1> to vector<8x128xi1>
    %13 = vector.broadcast %cst_3 : f32 to vector<8x128xf32>
    %14 = arith.select %12, %7, %13 : vector<8x128xi1>, vector<8x128xf32>
    %cst_4 = arith.constant dense<0.000000e+00> : vector<8xf32>
    %15 = vector.multi_reduction <add>, %14, %cst_4 [1] : vector<8x128xf32> to vector<8xf32>
    %16 = vector.shape_cast %15 : vector<8xf32> to vector<8x1xf32>
    %17 = tpu.reciprocal %16 {approx = true} : vector<8x1xf32> -> vector<8x1xf32>
    %18 = arith.mulf %16, %17 : vector<8x1xf32>
    %cst_5 = arith.constant 2.000000e+00 : f32
    %19 = vector.broadcast %cst_5 : f32 to vector<8x1xf32>
    %20 = arith.subf %19, %18 : vector<8x1xf32>
    %21 = arith.mulf %17, %20 : vector<8x1xf32>
    %22 = vector.broadcast %21 : vector<8x1xf32> to vector<8x128xf32>
    %23 = arith.mulf %14, %22 : vector<8x128xf32>
    %c0_6 = arith.constant 0 : index
    %c0_7 = arith.constant 0 : index
    %24 = vector.load %arg2[%c0_6, %c0_7] : memref<8x128xf32, #tpu.memory_space<vmem>>, vector<8x128xf32>
    tpu.vector_store %arg2[%c0_6, %c0_7], %23 {strides = array<i32>} : memref<8x128xf32, #tpu.memory_space<vmem>>, vector<8x128xf32>,
    return
  }
  func.func @transform_0(%arg0: i32) -> (i32, i32) {
    %c0_i32 = arith.constant 0 : i32
    %c0_i32_0 = arith.constant 0 : i32
    return %arg0, %c0_i32 : i32, i32
  }
  func.func @transform_1(%arg0: i32) -> (i32, i32) {
    %c0_i32 = arith.constant 0 : i32
    %c0_i32_0 = arith.constant 0 : i32
    return %arg0, %c0_i32 : i32, i32
  }
}

</mosaic_0001>

<bundles_post_ra>
// kernel: tpu_custom_call.1
= control target key start
LH: loop header
LB: loop body
LE: loop exit
PB: predicated region body
PF: predicated region fallthrough
CT: control target
= control target key end

     0   :  { %6 = vsyncpa [#allocation3], 0  ;;  %s566_s0 = inlined_call_operand.hbm [shape: f32[16,32], index: 0, kind: input, shape index: {}]   ;;  %s567_s1 = inlined_call_operand.hbm [shape: f32[16,32], index: 1, kind: output, shape index: {}]  }
   0x1   :  { %8 = vsyncpa [#allocation3 + $0x1], 0 }
   0x2   :  { %9 = vsyncpa [#allocation4], 0 }
   0x3   :  { %11 = vsyncpa [#allocation4 + $0x1], 0  ;;  %s405_s6 = smov 0   ;;  %s407_s7 = smov 0  }
   0x4   :  { %s409_s8 = smov 0   ;;  %s411_s9 = smov 0  }
   0x5 LB: > { %s426_s10 = sadd.s32 4294967295, %s391_s9   ;;  %s235_s11 = sadd.s32 4294967294, %s391_s9   ;;  %s391_s9 = sphi %s411_s9, %s582_s9   ;;  %s387_s8 = sphi %s409_s8, %s581_s8   ;;  %s383_s7 = sphi %s407_s7, %s580_s7   ;;  %s379_s6 = sphi %s405_s6, %s579_s6  }
   0x6   : > { %s430_s12 = sadd.s32 1, %s391_s9   ;;  %s24_s13 = sadd.s32 1, %s387_s8 }
   0x7   : > { %s21_s14 = ssub.s32 %s391_s9, %s430_s12  ;;  %p31_p0 = scmp.ne.s32.totalorder %s387_s8, %s383_s7 }
   0x8   : > { %p22_p1 = scmp.eq.s32.totalorder %s21_s14, 0  ;;  %p32_p2 = scmp.eq.s32.totalorder %s391_s9, 0 }
   0x9   : > { %p37_p3 = scmp.ne.s32.totalorder %s383_s7, %s379_s6  ;;  %p38_p4 = scmp.eq.s32.totalorder %s426_s10, 0 }
   0xa   : > { %s442_s15 = scalar_select %p22_p1, %s387_s8, %s24_s13  }
   0xb   : > { %p444_p5 = por %p32_p2, %p31_p0  ;;  %p448_p6 = por %p38_p4, %p37_p3 }
   0xc   : > { %p61_p7 = scmp.eq.s32.totalorder %s426_s10, 1  ;;  %p67_p8 = scmp.eq.s32.totalorder %s235_s11, 1 }
   0xd   : > { %p259_p10 = scmp.lt.s32.totalorder %s391_s9, 2  ;;  %s87_s20 = sand.u32 1, %s387_s8  }
   0xe   : > { %p455_p11 = por %p61_p7, %p31_p0  ;;  %p459_p12 = por %p67_p8, %p37_p3 }
   0xf   : > { %s239_s21 = sshll.u32 %s391_s9, 7  ;;  %s238_s22 = sshll.u32 %s87_s20, 3 }
  0x10   : > { %s571_s18 = scalar_select %p455_p11, 1, 0 }
  0x11   : > { %s572_s19 = scalar_select %p459_p12, 1, 0 }
  0x12   : > { %s468_s25 = scalar_lea.hbm %s566_s0, %s239_s21  ;;  %s91_s26 = scalar_lea.vmem [#allocation2], %s238_s22 }
  0x13   : > { %s98_s27 = sshll.u32 %s91_s26, 4  ;;  %p472_p13 = pnand %p259_p10, %p444_p5  ;;  %s476_s27 = int_to_ptr.vmem [resolvable:$true] %s98_s27 }
  0x14   : > { %s88_s29 = scalar_lea.sflag [#allocation3], %s87_s20  ;;  %s295_s30 = scalar_lea.hbm %s468_s25, 128 }
  0x15   : > { %p296_p2 = scmp.ne.s32.totalorder %s468_s25, %s295_s30  ;;  %p297_p3 = pneg %p472_p13 }
  0x16   : > { %s300_s4 = scalar_lea.hbm %s566_s0, 256  ;;  %p301_p5 = scmp.lt.u32.totalorder %s468_s25, %s566_s0 }
  0x17   : > { %p298_p4 = pnand %p297_p3, %p296_p2  ;;  %p302_p8 = scmp.lt.u32.totalorder %s300_s4, %s295_s30 }
  0x18   : > { %p304_p9 = scmp.lt.u32.totalorder %s295_s30, %s468_s25 }
  0x19   : > { %p299_p7 = pneg %p298_p4  ;;  %p303_p10 = por %p302_p8, %p301_p5 }
  0x1b   : > { %p305_p0 = por %p304_p9, %p303_p10 }
  0x1d   : > { %p306_p1 = pnand %p305_p0, %p299_p7 }
  0x1f   : > { %309 = shalt.err (!%p306_p1)
}
  0x20   : > { %s310_s13 = scalar_lea.vmem %s476_s27, 128  ;;  %s393_s14 = smov [#allocation2]  }
  0x21   : > { %p311_p2 = scmp.ne.s32.totalorder %s476_s27, %s310_s13  ;;  %s315_s16 = sshll.u32 %s393_s14, 4  ;;  %s316_s16 = int_to_ptr.vmem [resolvable:$false] %s315_s16 }
  0x22   : > { %s317_s20 = scalar_lea.vmem %s316_s16, 256  ;;  %p318_p11 = scmp.lt.s32.totalorder %s476_s27, %s316_s16 }
  0x23   : > { %p313_p4 = pnand %p311_p2, %p297_p3  ;;  %p319_p5 = scmp.lt.s32.totalorder %s317_s20, %s310_s13 }
  0x25   : > { %p314_p12 = pneg %p313_p4  ;;  %p320_p8 = por %p319_p5, %p318_p11 }
  0x27   : > { %p321_p9 = pnand %p320_p8, %p314_p12 }
  0x29   : > { %324 = shalt.err (!%p321_p9)
}
  0x2a   : > { %254 = dma.hbm_to_vmem [thread:$0]  (!%p472_p13), %s468_s25, 128, %s476_s27, %s88_s29  }
  0x2b   : > { %p574_p0 = scmp.lt.s32.totalorder %s391_s9, 3  ;;  %p575_p1 = scmp.ge.s32.totalorder %s391_s9, 1 }
  0x2d   : > { %p104_p3 = pnand %p575_p1, %p574_p0 }
  0x2e   : > { %s510_s21 = sand.u32 (!%p104_p3), 1, %s383_s7  }
  0x2f   : > { %107 = sbr.rel (%p104_p3) target bundleno = 240 (0xf0), region = 24  ;;  %s241_s22 = sshll.u32 (!%p104_p3), %s510_s21, 3 }
  0x30   : > { %s110_s23 = scalar_lea.sflag (!%p104_p3), [#allocation3], %s510_s21  ;;  %s113_s24 = scalar_lea.vmem (!%p104_p3), [#allocation2], %s241_s22 }
  0x36   : > { %370 = dma.done.wait (%p448_p6), %s110_s23, 128  }
  0x37   : > { %372 = vsyncadd (%p448_p6), %s110_s23, 4294967168  ;;  %v137_v0 = vlaneseq  ;;  %v132_v1 = vld [vmem:[%s113_s24] sm:$0xff]  ;;  %s244_s17 = sshll.u32 %s426_s10, 7  ;;  %s131_s25 = scalar_lea.vmem [#allocation5], %s241_s22 }
  0x38   : > { %v133_v2 = vmul.f32 0.5, %v132_v1  ;;  %s165_s26 = sshll.u32 %s131_s25, 4  ;;  %s522_s29 = scalar_lea.hbm %s567_s1, %s244_s17  ;;  %s524_s26 = int_to_ptr.vmem [resolvable:$true] %s165_s26 }
  0x39   : > { %v138_v3 = vand.u32 127, %v137_v0  ;;  %s152_s30 = scalar_lea.sflag [#allocation4], %s510_s21  ;;  %s325_s2 = scalar_lea.vmem %s524_s26, 128 }
  0x3a   : > { %v134_v4 = vadd.f32 1.0, %v133_v2  ;;  %p326_p6 = scmp.ne.s32.totalorder %s524_s26, %s325_s2  ;;  %p576_p11 = scmp.ne.s32.totalorder %s571_s18, 0 }
  0x3b   : > { %vm139_vm0 = vcmp.lt.s32.totalorder %v138_v3, 32  ;;  %s394_s10 = smov [#allocation5]  }
  0x3c   : > { %v135_v5 = vmul.f32 %v134_v4, %v132_v1  ;;  %p327_p12 = pnand %p326_p6, %p576_p11  ;;  %s329_s3 = sshll.u32 %s394_s10, 4  ;;  %s330_s3 = int_to_ptr.vmem [resolvable:$false] %s329_s3 }
  0x3d   : > { %s331_s4 = scalar_lea.vmem %s330_s3, 256  ;;  %p332_p7 = scmp.lt.s32.totalorder %s524_s26, %s330_s3 }
  0x3e   : > { %v136_v6 = vadd.f32 1.0, %v135_v5  ;;  %p328_p13 = pneg %p327_p12  ;;  %p333_p10 = scmp.lt.s32.totalorder %s331_s4, %s325_s2 }
  0x40   : > { %v142_v7 = vsel %vm139_vm0, %v136_v6, 0.0  ;;  %p334_p2 = por %p333_p10, %p332_p7 }
  0x41   : > { %143 = vadd.xlane.f32.xlu0 %v142_v7 }
  0x42   : > { %p335_p4 = pnand %p334_p2, %p328_p13 }
  0xce   : > { %v144_v8 = vpop.xlane.xlu0 %143 }
  0xcf   : > { %293 = vrcp.f32 %v144_v8 }
  0xd9   : > { %v294_v9 = vpop.eup %293 }
  0xda   : > { %v146_v10 = vmul.f32 %v294_v9, %v144_v8 }
  0xdc   : > { %v147_v11 = vsub.f32 2.0, %v146_v10 }
  0xde   : > { %v148_v12 = vmul.f32 %v294_v9, %v147_v11 }
  0xe0   : > { %v149_v13 = vmul.f32 %v148_v12, %v142_v7 }
  0xe2   : > { %150 = vst [vmem:[%s131_s25] sm:$0xff] %v149_v13 }
  0xe3   : > { %338 = shalt.err (!%p335_p4)
}
  0xe4   : > { %s339_s5 = scalar_lea.hbm %s522_s29, 128  ;;  %s343_s14 = scalar_lea.hbm %s567_s1, 256 }
  0xe5   : > { %p340_p5 = scmp.ne.s32.totalorder %s522_s29, %s339_s5  ;;  %p344_p0 = scmp.lt.u32.totalorder %s522_s29, %s567_s1 }
  0xe6   : > { %p345_p1 = scmp.lt.u32.totalorder %s343_s14, %s339_s5  ;;  %p347_p6 = scmp.lt.u32.totalorder %s339_s5, %s522_s29 }
  0xe7   : > { %p341_p8 = pnand %p340_p5, %p576_p11 }
  0xe8   : > { %p346_p3 = por %p345_p1, %p344_p0 }
  0xe9   : > { %p342_p9 = pneg %p341_p8 }
  0xea   : > { %p348_p12 = por %p347_p6, %p346_p3 }
  0xec   : > { %p349_p13 = pnand %p348_p12, %p342_p9 }
  0xee   : > { %352 = shalt.err (!%p349_p13)
}
  0xef   : > { %249 = dma.vmem_to_hbm [thread:$0]  (%p576_p11), %s524_s26, 128, %s522_s29, %s152_s30  }
  0xf0 PF: > { %s177_s21 = sand.u32 1, %s379_s6   ;;  %p577_p7 = scmp.ne.s32.totalorder %s572_s19, 0 }
  0xf1   : > { %p578_p10 = scmp.ge.s32.totalorder %s391_s9, 2  ;;  %s178_s22 = scalar_lea.sflag [#allocation4], %s177_s21 }
  0xf3   : > { %p256_p2 = pnand %p578_p10, %p577_p7 }
  0xf5   : > { %374 = dma.done.wait (!%p256_p2), %s178_s22, 128  }
  0xf6   : > { %376 = vsyncadd (!%p256_p2), %s178_s22, 4294967168  ;;  %p14_p4 = scmp.ge.s32.totalorder %s430_s12, 4   ;;  %s579_s6 = smov %s383_s7 }
  0xf7   : > { %s580_s7 = smov %s387_s8  ;;  %s581_s8 = smov %s442_s15 }
  0xf8   : > { %s582_s9 = smov %s430_s12  ;;  %16 = sbr.rel (!%p14_p4) target bundleno = 5 (0x5), region = 69 }
  0xff   :  { %183 = vsyncpa [#allocation3], 1 }
 0x100   :  { %185 = vsyncpa [#allocation3 + $0x1], 1 }
 0x101   :  { %186 = vsyncpa [#allocation4], 1 }
 0x102   :  { %188 = vsyncpa [#allocation4 + $0x1], 1 }

</bundles_post_ra>
